<compile_context>
chip_gen: v5e
topology: v5e:2x2
jax: 0.10.0
libtpu: 0.0.40
codegen_flags: <defaults>
</compile_context>

<pallas_src>
import jax
import jax.numpy as jnp
from jax.experimental import pallas as pl
from jax.experimental.pallas import tpu as pltpu


def _spatial_attention_kernel(x_ref, ma_ref, mm_ref, b_ref, o_ref):
    """x_ref/o_ref: (Bt, C, HWp) f32; ma_ref/mm_ref: (HWp, HWp) bf16; b_ref: (1,) SMEM."""
    x = x_ref[...]                                    # (Bt, C, HWp) f32
    c = x.shape[1]

    # Channel-wise pooling: sublane-axis reductions -> (Bt, HWp).
    avg = jnp.sum(x, axis=1) * (1.0 / c)
    mx = jnp.max(x, axis=1)

    # 7x7 conv as two small MXU matmuls (bf16 single-pass, f32 accumulate).
    # No lane concat of [avg, max]; accumulate the two dots instead.
    conv = jnp.dot(avg.astype(ma_ref.dtype), ma_ref[...],
                   preferred_element_type=jnp.float32)
    conv = conv + jnp.dot(mx.astype(mm_ref.dtype), mm_ref[...],
                          preferred_element_type=jnp.float32)
    conv = conv + b_ref[0]                            # scalar bias from SMEM

    # sigmoid: exp + reciprocal both on the EUP slot.
    att = pl.reciprocal(1.0 + jnp.exp(-conv), approx=True)   # (Bt, HWp)

    # Per-pixel attention broadcast over all channels (sublanes).
    o_ref[...] = (x * att[:, None, :]).astype(o_ref.dtype)


def _conv_to_matrices(conv_w, H, W, HW_pad):
    """Two Toeplitz matrices (HW_pad, HW_pad), one per pooled channel.

    M_c[h_in*W + w_in, h_out*W + w_out] = w[0, c, h_in-h_out+P, w_in-w_out+P]
    when the kernel offset is in range, else 0 (zero-padded Conv2d(2,1,K,pad=P)).
    Rows/cols beyond HW are zero, so padded lanes contribute nothing.
    """
    K = conv_w.shape[-1]
    P = (K - 1) // 2
    HW = H * W
    h = jnp.arange(H)
    w = jnp.arange(W)
    di = h[:, None] - h[None, :] + P                  # (H_in, H_out)
    dj = w[:, None] - w[None, :] + P                  # (W_in, W_out)
    vi = (di >= 0) & (di < K)
    vj = (dj >= 0) & (dj < K)
    di_c = jnp.clip(di, 0, K - 1)
    dj_c = jnp.clip(dj, 0, K - 1)
    # (2, H_in, W_in, H_out, W_out)
    m = conv_w[0][:, di_c[:, None, :, None], dj_c[None, :, None, :]]
    valid = (vi[:, None, :, None] & vj[None, :, None, :])[None]
    m = (m * valid.astype(m.dtype)).reshape(2, HW, HW)
    if HW_pad != HW:
        m = jnp.pad(m, ((0, 0), (0, HW_pad - HW), (0, HW_pad - HW)))
    m = m.astype(jnp.bfloat16)                        # halve M footprint, 1-pass MXU
    return m[0], m[1]


def _pick_block_b(B, C, HW_pad, x_itemsize, *, target_block_bytes=4 << 20,
                  vmem_budget_bytes=12 << 20, min_steps=2):
    """Largest divisor of B with >=min_steps grid steps (v7x: 2 TensorCores),
    a multi-MiB x block (amortize per-step overhead), and an estimated VMEM
    footprint (double-buffered in/out + the two bf16 conv matrices) under a
    budget that fits every generation's default scoped VMEM limit."""
    m_bytes = 2 * 2 * HW_pad * HW_pad * 2             # two bf16 matrices, 2 buffers each
    best = 1
    for bb in range(1, B + 1):
        if B % bb:
            continue
        if B >= min_steps and (B // bb) < min_steps:
            continue                                   # keep both v7x cores busy
        x_block = bb * C * HW_pad * x_itemsize
        if x_block > target_block_bytes:
            continue
        if 4 * x_block + m_bytes > vmem_budget_bytes:  # in+out, double-buffered
            continue
        best = bb
    return best


def spatial_attention(x_nchw, conv_w, conv_b, *, block_b=None):
    """x_nchw: (B, C, H, W) f32. conv_w: (1, 2, K, K) OIHW. conv_b: (1,)."""
    B, C, H, W = x_nchw.shape
    HW = H * W
    HW_pad = ((HW + 127) // 128) * 128                # lane-dense output stores

    x = x_nchw.reshape(B, C, HW)                      # free: HW contiguous in NCHW
    if HW_pad != HW:
        x = jnp.pad(x, ((0, 0), (0, 0), (0, HW_pad - HW)))

    m_avg, m_max = _conv_to_matrices(conv_w.astype(jnp.float32), H, W, HW_pad)
    b1 = conv_b.reshape(1).astype(jnp.float32)

    if block_b is None:
        block_b = _pick_block_b(B, C, HW_pad, x.dtype.itemsize)
    assert B % block_b == 0

    out = pl.pallas_call(
        _spatial_attention_kernel,
        out_shape=jax.ShapeDtypeStruct((B, C, HW_pad), x.dtype),
        grid_spec=pltpu.PrefetchScalarGridSpec(
            num_scalar_prefetch=0,
            grid=(B // block_b,),
            in_specs=[
                pl.BlockSpec((block_b, C, HW_pad), lambda i: (i, 0, 0)),
                pl.BlockSpec((HW_pad, HW_pad), lambda i: (0, 0)),   # grid-invariant
                pl.BlockSpec((HW_pad, HW_pad), lambda i: (0, 0)),   # grid-invariant
                pl.BlockSpec(memory_space=pltpu.MemorySpace.SMEM),  # scalar bias
            ],
            out_specs=pl.BlockSpec((block_b, C, HW_pad), lambda i: (i, 0, 0)),
        ),
        compiler_params=pltpu.CompilerParams(
            dimension_semantics=("parallel",),
        ),
    )(x, m_avg, m_max, b1)

    if HW_pad != HW:
        out = out[:, :, :HW]
    return out.reshape(B, C, H, W)


def spatial_attention_ref(x, conv_w, conv_b):
    """Pure-JAX reference matching the PyTorch forward (exact f32 shift-add conv)."""
    B, C, H, W = x.shape
    K = conv_w.shape[-1]
    P = (K - 1) // 2
    avg = jnp.mean(x, axis=1)                          # (B, H, W)
    mx = jnp.max(x, axis=1)                            # (B, H, W)
    maps = jnp.stack([avg, mx], axis=1)                # (B, 2, H, W)
    mp = jnp.pad(maps, ((0, 0), (0, 0), (P, P), (P, P)))
    conv = jnp.full((B, H, W), conv_b[0], dtype=x.dtype)
    for c in range(2):
        for i in range(K):
            for j in range(K):
                conv = conv + conv_w[0, c, i, j] * mp[:, c, i:i + H, j:j + W]
    att = jax.nn.sigmoid(conv)[:, None, :, :]
    return x * att


if __name__ == "__main__":
    B, C, H, W = 4, 32, 16, 16
    K = 7                                             # kernel_size=7, padding=3

    key = jax.random.PRNGKey(0)
    kx, kw, kb = jax.random.split(key, 3)
    x = jax.random.normal(kx, (B, C, H, W), dtype=jnp.float32)
    conv_w = jax.random.normal(kw, (1, 2, K, K), dtype=jnp.float32) * 0.1
    conv_b = jax.random.normal(kb, (1,), dtype=jnp.float32) * 0.1

    y = jax.block_until_ready(spatial_attention(x, conv_w, conv_b))
    y_ref = spatial_attention_ref(x, conv_w, conv_b)

    assert y.shape == (B, C, H, W)
    # bf16 single-pass MXU matmuls for the 98-tap conv + approx EUP reciprocal
    # give ~1e-3-level deviations vs the exact-f32 reference; 5e-3 covers it.
    err = float(jnp.max(jnp.abs(y - y_ref)))
    assert jnp.allclose(y, y_ref, atol=5e-3, rtol=5e-3), f"mismatch vs reference, max abs err={err}"

    print("KERNEL_OK")
</pallas_src>

<mosaic_0001>
module attributes {stable_mosaic.version = 11 : i64} {
  func.func @_spatial_attention_kernel(%arg0: i32, %arg1: memref<2x32x256xf32, #tpu.memory_space<vmem>>, %arg2: memref<256x256xbf16, #tpu.memory_space<vmem>>, %arg3: memref<256x256xbf16, #tpu.memory_space<vmem>>, %arg4: memref<1xf32, #tpu.memory_space<smem>>, %arg5: memref<2x32x256xf32, #tpu.memory_space<vmem>>) attributes {dimension_semantics = [#tpu.dimension_semantics<parallel>], iteration_bounds = array<i64: 2>, scalar_prefetch = 0 : i64, scratch_operands = 0 : i64, tpu.core_type = #tpu.core_type<tc>, window_params = [{transform_indices = @transform_0, window_bounds = array<i64: 2, 32, 256>}, {pipeline_mode = #tpu.pipeline_mode<synchronous>, transform_indices = @transform_1, window_bounds = array<i64: 256, 256>}, {pipeline_mode = #tpu.pipeline_mode<synchronous>, transform_indices = @transform_2, window_bounds = array<i64: 256, 256>}, {transform_indices = @transform_3, window_bounds = array<i64: 1>}, {transform_indices = @transform_4, window_bounds = array<i64: 2, 32, 256>}]} {
    %c0 = arith.constant 0 : index
    %c0_0 = arith.constant 0 : index
    %c0_1 = arith.constant 0 : index
    %0 = vector.load %arg1[%c0, %c0_0, %c0_1] : memref<2x32x256xf32, #tpu.memory_space<vmem>>, vector<2x32x256xf32>
    %cst = arith.constant dense<0.000000e+00> : vector<2x256xf32>
    %1 = vector.multi_reduction <add>, %0, %cst [1] : vector<2x32x256xf32> to vector<2x256xf32>
    %cst_2 = arith.constant 3.125000e-02 : f32
    %2 = vector.broadcast %cst_2 : f32 to vector<2x256xf32>
    %3 = arith.mulf %1, %2 : vector<2x256xf32>
    %cst_3 = arith.constant dense<0xFF800000> : vector<2x256xf32>
    %4 = vector.multi_reduction <maximumf>, %0, %cst_3 [1] : vector<2x32x256xf32> to vector<2x256xf32>
    %5 = arith.truncf %3 : vector<2x256xf32> to vector<2x256xbf16>
    %c0_4 = arith.constant 0 : index
    %c0_5 = arith.constant 0 : index
    %6 = vector.load %arg2[%c0_4, %c0_5] : memref<256x256xbf16, #tpu.memory_space<vmem>>, vector<256x256xbf16>
    %cst_6 = arith.constant dense<0.000000e+00> : vector<2x256xf32>
    %7 = tpu.matmul %5, %6, %cst_6 {dimension_numbers = #tpu.dot_dimension_numbers<[1], [0], [0], [1], [0, 0, 1, 1], [], []>} : vector<2x256xbf16>, vector<256x256xbf16>, vector<2x256xf32> -> vector<2x256xf32>
    %8 = arith.truncf %4 : vector<2x256xf32> to vector<2x256xbf16>
    %c0_7 = arith.constant 0 : index
    %c0_8 = arith.constant 0 : index
    %9 = vector.load %arg3[%c0_7, %c0_8] : memref<256x256xbf16, #tpu.memory_space<vmem>>, vector<256x256xbf16>
    %cst_9 = arith.constant dense<0.000000e+00> : vector<2x256xf32>
    %10 = tpu.matmul %8, %9, %cst_9 {dimension_numbers = #tpu.dot_dimension_numbers<[1], [0], [0], [1], [0, 0, 1, 1], [], []>} : vector<2x256xbf16>, vector<256x256xbf16>, vector<2x256xf32> -> vector<2x256xf32>
    %11 = arith.addf %7, %10 : vector<2x256xf32>
    %c0_10 = arith.constant 0 : index
    %12 = memref.load %arg4[%c0_10] : memref<1xf32, #tpu.memory_space<smem>>
    %13 = vector.broadcast %12 : f32 to vector<2x256xf32>
    %14 = arith.addf %11, %13 : vector<2x256xf32>
    %cst_11 = arith.constant 0.000000e+00 : f32
    %15 = vector.broadcast %cst_11 : f32 to vector<2x256xf32>
    %16 = arith.subf %15, %14 : vector<2x256xf32>
    %17 = math.exp %16 : vector<2x256xf32>
    %cst_12 = arith.constant 1.000000e+00 : f32
    %18 = vector.broadcast %cst_12 : f32 to vector<2x256xf32>
    %19 = arith.addf %18, %17 : vector<2x256xf32>
    %20 = tpu.reciprocal %19 {approx = true} : vector<2x256xf32> -> vector<2x256xf32>
    %21 = vector.shape_cast %20 : vector<2x256xf32> to vector<2x1x256xf32>
    %22 = vector.broadcast %21 : vector<2x1x256xf32> to vector<2x32x256xf32>
    %23 = arith.mulf %0, %22 : vector<2x32x256xf32>
    %c0_13 = arith.constant 0 : index
    %c0_14 = arith.constant 0 : index
    %c0_15 = arith.constant 0 : index
    %24 = vector.load %arg5[%c0_13, %c0_14, %c0_15] : memref<2x32x256xf32, #tpu.memory_space<vmem>>, vector<2x32x256xf32>
    tpu.vector_store %arg5[%c0_13, %c0_14, %c0_15], %23 {strides = array<i32>} : memref<2x32x256xf32, #tpu.memory_space<vmem>>, vector<2x32x256xf32>,
    return
  }
  func.func @transform_0(%arg0: i32) -> (i32, i32, i32) {
    %c0_i32 = arith.constant 0 : i32
    %c0_i32_0 = arith.constant 0 : i32
    %c0_i32_1 = arith.constant 0 : i32
    return %arg0, %c0_i32, %c0_i32_0 : i32, i32, i32
  }
  func.func @transform_1(%arg0: i32) -> (i32, i32) {
    %c0_i32 = arith.constant 0 : i32
    %c0_i32_0 = arith.constant 0 : i32
    %c0_i32_1 = arith.constant 0 : i32
    return %c0_i32, %c0_i32_0 : i32, i32
  }
  func.func @transform_2(%arg0: i32) -> (i32, i32) {
    %c0_i32 = arith.constant 0 : i32
    %c0_i32_0 = arith.constant 0 : i32
    %c0_i32_1 = arith.constant 0 : i32
    return %c0_i32, %c0_i32_0 : i32, i32
  }
  func.func @transform_3(%arg0: i32) -> i32 {
    %c0_i32 = arith.constant 0 : i32
    %c0_i32_0 = arith.constant 0 : i32
    return %c0_i32 : i32
  }
  func.func @transform_4(%arg0: i32) -> (i32, i32, i32) {
    %c0_i32 = arith.constant 0 : i32
    %c0_i32_0 = arith.constant 0 : i32
    %c0_i32_1 = arith.constant 0 : i32
    return %arg0, %c0_i32, %c0_i32_0 : i32, i32, i32
  }
}

</mosaic_0001>

<bundles_post_ra>
// kernel: tpu_custom_call.1
= control target key start
LH: loop header
LB: loop body
LE: loop exit
PB: predicated region body
PF: predicated region fallthrough
CT: control target
= control target key end

     0   :  { %s1959_s0 = inlined_call_operand.hbm [shape: f32[4,32,256], index: 0, kind: input, shape index: {}]   ;;  %s1960_s1 = inlined_call_operand.hbm [shape: bf16[256,256], index: 1, kind: input, shape index: {}]   ;;  %s1961_s2 = inlined_call_operand.hbm [shape: bf16[256,256], index: 2, kind: input, shape index: {}]   ;;  %s1962_s3 = inlined_call_operand.<no memory space> [shape: f32[1], index: 3, kind: input, shape index: {}]   ;;  %s1963_s4 = inlined_call_operand.hbm [shape: f32[4,32,256], index: 4, kind: output, shape index: {}]  }
   0x1   :  { %9 = sst [smem:[#allocation2]] %s1962_s3 }
   0x2   :  { %10 = vsyncpa [#allocation4], 0 }
   0x3   :  { %12 = vsyncpa [#allocation4 + $0x1], 0 }
   0x4   :  { %13 = vsyncpa [#allocation7], 0 }
   0x5   :  { %14 = vsyncpa [#allocation5], 0 }
   0x6   :  { %16 = vsyncpa [#allocation5 + $0x1], 0  ;;  %s1665_s17 = smov 0   ;;  %s1667_s18 = smov 0  }
   0x7   :  { %s1669_s19 = smov 0   ;;  %s1671_s20 = smov 0  }
   0x8 LB: > { %s1686_s3 = sadd.s32 4294967295, %s1627_s20   ;;  %s1042_s21 = sadd.s32 4294967294, %s1627_s20   ;;  %s1627_s20 = sphi %s1671_s20, %s1973_s20   ;;  %s1623_s19 = sphi %s1669_s19, %s1972_s19   ;;  %s1619_s18 = sphi %s1667_s18, %s1971_s18   ;;  %s1615_s17 = sphi %s1665_s17, %s1970_s17  }
   0x9   : > { %p42_p0 = scmp.ne.s32.totalorder %s1619_s18, %s1615_s17  ;;  %p43_p1 = scmp.eq.s32.totalorder %s1686_s3, 0 }
   0xa   : > { %p129_p2 = scmp.eq.s32.totalorder %s1686_s3, 1  ;;  %p135_p3 = scmp.eq.s32.totalorder %s1042_s21, 1 }
   0xb   : > { %p1695_p4 = por %p43_p1, %p42_p0  ;;  %p1043_p5 = scmp.ge.s32.totalorder %s1627_s20, 1 }
   0xc   : > { %p1700_p6 = por %p135_p3, %p42_p0  ;;  %p142_p7 = scmp.lt.s32.totalorder %s1627_s20, 3 }
   0xd   : > { %s153_s26 = sshll.u32 %s1960_s1, 4  ;;  %s1629_s28 = smov [#allocation6]   ;;  %s154_s26 = int_to_ptr.hbm [resolvable:$true] %s153_s26 }
   0xe   : > { %p1708_p8 = pnand %p1043_p5, %p142_p7  ;;  %s155_s29 = sshll.u32 %s1629_s28, 4  ;;  %s156_s29 = int_to_ptr.vmem [resolvable:$true] %s155_s29 }
   0xf   : > { %s167_s6 = sshll.u32 %s1961_s2, 4  ;;  %s1630_s7 = smov 128   ;;  %s168_s6 = int_to_ptr.hbm [resolvable:$true] %s167_s6 }
  0x10   : > { %p1398_p9 = pneg %p1708_p8  ;;  %s1631_s8 = smov 8  }
  0x11   : > { %s1632_s9 = smov [#allocation8]   ;;  %s1721_s11 = sadd.s32 1, %s1627_s20  }
  0x12   : > { %p1399_p10 = pnand %p1398_p9, %p43_p1  ;;  %s169_s10 = sshll.u32 %s1632_s9, 4  ;;  %s170_s10 = int_to_ptr.vmem [resolvable:$true] %s169_s10 }
  0x13   : > { %s29_s12 = sadd.s32 1, %s1623_s19  ;;  %s26_s13 = ssub.s32 %s1627_s20, %s1721_s11 }
  0x14   : > { %1401 = dma.hbm_to_vmem [thread:$0]  (!%p1399_p10), %s154_s26, 4096, %s156_s29, [#allocation7], %s1630_s7, %s1630_s7, %s1631_s8  }
  0x15   : > { %1404 = dma.hbm_to_vmem [thread:$0]  (!%p1399_p10), %s168_s6, 4096, %s170_s10, [#allocation7], %s1630_s7, %s1630_s7, %s1631_s8  }
  0x16   : > { %p36_p12 = scmp.ne.s32.totalorder %s1623_s19, %s1619_s18  ;;  %p27_p13 = scmp.eq.s32.totalorder %s26_s13, 0 }
  0x17   : > { %p37_p0 = scmp.eq.s32.totalorder %s1627_s20, 0  ;;  %p1415_p5 = scmp.lt.s32.totalorder %s1627_s20, 2 }
  0x18   : > { %p1731_p3 = por %p129_p2, %p36_p12  ;;  %s186_s16 = sand.u32 1, %s1623_s19  }
  0x19   : > { %s1737_s15 = scalar_select %p27_p13, %s1623_s19, %s29_s12  }
  0x1a   : > { %p38_p7 = por %p37_p0, %p36_p12  ;;  %s1047_s21 = sshll.u32 %s186_s16, 7 }
  0x1b   : > { %s1319_s24 = sshll.u32 %s1627_s20, 7  ;;  %s190_s29 = scalar_lea.vmem [#allocation3], %s1047_s21 }
  0x1c   : > { %s196_s28 = scalar_lea.hbm %s1959_s0, %s1319_s24  ;;  %s199_s30 = sshll.u32 %s190_s29, 4  ;;  %s200_s30 = int_to_ptr.vmem [resolvable:$true] %s199_s30 }
  0x1d   : > { %s197_s5 = sshll.u32 %s196_s28, 4  ;;  %p1744_p2 = pnand %p1415_p5, %p38_p7  ;;  %s198_s5 = int_to_ptr.hbm [resolvable:$true] %s197_s5 }
  0x1e   : > { %s187_s7 = scalar_lea.sflag [#allocation4], %s186_s16  ;;  %s1527_s8 = sshra.s32 %s198_s5, 4  ;;  %s1528_s8 = int_to_ptr.hbm [resolvable:$true] %s1527_s8 }
  0x1f   : > { %s1529_s9 = scalar_lea.hbm %s1528_s8, 128  ;;  %p1531_p10 = pneg %p1744_p2 }
  0x20   : > { %p1530_p9 = scmp.ne.s32.totalorder %s1528_s8, %s1529_s9  ;;  %s1534_s13 = scalar_lea.hbm %s1959_s0, 256 }
  0x21   : > { %p1535_p0 = scmp.lt.s32.totalorder %s1528_s8, %s1959_s0  ;;  %p1536_p5 = scmp.lt.s32.totalorder %s1534_s13, %s1529_s9 }
  0x22   : > { %p1532_p12 = pnand %p1531_p10, %p1530_p9 }
  0x23   : > { %p1537_p7 = por %p1536_p5, %p1535_p0 }
  0x24   : > { %p1533_p13 = pneg %p1532_p12 }
  0x26   : > { %p1538_p11 = pnand %p1537_p7, %p1533_p13 }
  0x28   : > { %1541 = shalt.err (!%p1538_p11)
}
  0x29   : > { %s1633_s16 = smov 256   ;;  %s1634_s25 = smov 16  }
  0x2a   : > { %1408 = dma.hbm_to_vmem [thread:$0]  (!%p1744_p2), %s198_s5, 2048, %s200_s30, %s187_s7, %s1633_s16, %s1633_s16, %s1634_s25  }
  0x2b   : > { %211 = sbr.rel (%p1708_p8) target bundleno = 308 (0x134), region = 36  ;;  %s1761_s26 = sand.u32 (!%p1708_p8), 1, %s1619_s18  }
  0x2c   : > { %s1052_s28 = sshll.u32 (!%p1708_p8), %s1761_s26, 7  ;;  %s214_s29 = scalar_lea.sflag (!%p1708_p8), [#allocation4], %s1761_s26 }
  0x2d   : > { %s1767_s8 = scalar_lea.vmem (!%p1708_p8), [#allocation3], %s1052_s28 }
  0x30   : > { %1602 = dma.done.wait (%p1695_p4), %s214_s29, 2048  }
  0x31   : > { %1604 = vsyncadd (%p1695_p4), %s214_s29, 4294965248 }
  0x32   : > { %1606 = dma.done.wait (%p43_p1), [#allocation7], 8192  }
  0x33   : > { %1608 = vsyncadd (%p43_p1), [#allocation7], 4294959104  ;;  %v1114_v0 = vld [vmem:[#allocation8 + $0x70] sm:$0xf]  ;;  %v1367_v1 = vld [vmem:[#allocation8 + $0x74] sm:$0xf0] }
  0x34   : > { %v1366_v2 = vld [vmem:[#allocation8 + $0x74] sm:$0xf]  ;;  %v1115_v3 = vor.u32 %v1367_v1, %v1114_v0  ;;  %v1116_v4 = vld [vmem:[#allocation8 + $0x78] sm:$0xf0]  ;;  %v1178_v9 = vld [vmem:[#allocation8 + $0xf0] sm:$0xf] }
  0x35   : > { %v1382_v5 = vld [vmem:[#allocation8 + $0xf4] sm:$0xf]  ;;  %v1180_v6 = vld [vmem:[#allocation8 + $0xf8] sm:$0xf0]  ;;  %v1119_v7 = vor.u32 %v1366_v2, %v1116_v4  ;;  %v1383_v10 = vld [vmem:[#allocation8 + $0xf4] sm:$0xf0] }
  0x36   : > { %v1183_v8 = vor.u32 %v1382_v5, %v1180_v6  ;;  %v1106_v11 = vld [vmem:[#allocation8 + $0x60] sm:$0xf]  ;;  %594 = vmatpush.bf16.msra.mxu0 %v1115_v3  ;;  %v1179_v12 = vor.u32 %v1383_v10, %v1178_v9  ;;  %v1365_v13 = vld [vmem:[#allocation8 + $0x64] sm:$0xf0]  ;;  %v1364_v14 = vld [vmem:[#allocation8 + $0x64] sm:$0xf] }
  0x37   : > { %v1108_v15 = vld [vmem:[#allocation8 + $0x68] sm:$0xf0]  ;;  %620 = vmatpush.bf16.msra.mxu2 %v1119_v7  ;;  %v1107_v16 = vor.u32 %v1365_v13, %v1106_v11  ;;  %v1380_v18 = vld [vmem:[#allocation8 + $0xe4] sm:$0xf]  ;;  %v1170_v20 = vld [vmem:[#allocation8 + $0xe0] sm:$0xf] }
  0x38   : > { %633 = vmatpush.bf16.msra.mxu3 %v1183_v8  ;;  %v1111_v17 = vor.u32 %v1364_v14, %v1108_v15  ;;  %v1172_v19 = vld [vmem:[#allocation8 + $0xe8] sm:$0xf0]  ;;  %607 = vmatpush.bf16.msra.mxu1 %v1179_v12  ;;  %v1381_v22 = vld [vmem:[#allocation8 + $0xe4] sm:$0xf0]  ;;  %v1098_v23 = vld [vmem:[#allocation8 + $0x50] sm:$0xf] }
  0x39   : > { %v1175_v21 = vor.u32 %v1380_v18, %v1172_v19  ;;  %v1363_v24 = vld [vmem:[#allocation8 + $0x54] sm:$0xf0]  ;;  %v1171_v25 = vor.u32 %v1381_v22, %v1170_v20  ;;  %v1362_v26 = vld [vmem:[#allocation8 + $0x54] sm:$0xf]  ;;  %v1100_v27 = vld [vmem:[#allocation8 + $0x58] sm:$0xf0] }
  0x3a   : > { %v1378_v28 = vld [vmem:[#allocation8 + $0xd4] sm:$0xf]  ;;  %595 = vmatpush.bf16.msra.mxu0 %v1107_v16  ;;  %v1099_v29 = vor.u32 %v1363_v24, %v1098_v23  ;;  %v1164_v30 = vld [vmem:[#allocation8 + $0xd8] sm:$0xf0]  ;;  %v1162_v31 = vld [vmem:[#allocation8 + $0xd0] sm:$0xf]  ;;  %v1103_v33 = vor.u32 %v1362_v26, %v1100_v27 }
  0x3b   : > { %v1379_v32 = vld [vmem:[#allocation8 + $0xd4] sm:$0xf0]  ;;  %621 = vmatpush.bf16.msra.mxu2 %v1111_v17  ;;  %v1167_v34 = vor.u32 %v1378_v28, %v1164_v30  ;;  %v1090_v35 = vld [vmem:[#allocation8 + $0x40] sm:$0xf]  ;;  %v1361_v36 = vld [vmem:[#allocation8 + $0x44] sm:$0xf0] }
  0x3c   : > { %634 = vmatpush.bf16.msra.mxu3 %v1175_v21  ;;  %v1360_v37 = vld [vmem:[#allocation8 + $0x44] sm:$0xf]  ;;  %608 = vmatpush.bf16.msra.mxu1 %v1171_v25  ;;  %v1163_v38 = vor.u32 %v1379_v32, %v1162_v31  ;;  %v1092_v39 = vld [vmem:[#allocation8 + $0x48] sm:$0xf0]  ;;  %v1154_v42 = vld [vmem:[#allocation8 + $0xc0] sm:$0xf]  ;;  %v1091_v44 = vor.u32 %v1361_v36, %v1090_v35 }
  0x3d   : > { %v1376_v40 = vld [vmem:[#allocation8 + $0xc4] sm:$0xf]  ;;  %v1156_v41 = vld [vmem:[#allocation8 + $0xc8] sm:$0xf0]  ;;  %v1377_v43 = vld [vmem:[#allocation8 + $0xc4] sm:$0xf0]  ;;  %v1095_v45 = vor.u32 %v1360_v37, %v1092_v39 }
  0x3e   : > { %596 = vmatpush.bf16.msra.mxu0 %v1099_v29  ;;  %v1159_v46 = vor.u32 %v1376_v40, %v1156_v41  ;;  %v1082_v47 = vld [vmem:[#allocation8 + $0x30] sm:$0xf]  ;;  %v1359_v48 = vld [vmem:[#allocation8 + $0x34] sm:$0xf0]  ;;  %v1358_v49 = vld [vmem:[#allocation8 + $0x34] sm:$0xf]  ;;  %v1155_v50 = vor.u32 %v1377_v43, %v1154_v42 }
  0x3f   : > { %622 = vmatpush.bf16.msra.mxu2 %v1103_v33  ;;  %v1084_v51 = vld [vmem:[#allocation8 + $0x38] sm:$0xf0]  ;;  %v1374_v52 = vld [vmem:[#allocation8 + $0xb4] sm:$0xf]  ;;  %v1146_v54 = vld [vmem:[#allocation8 + $0xb0] sm:$0xf]  ;;  %v1083_v56 = vor.u32 %v1359_v48, %v1082_v47 }
  0x40   : > { %635 = vmatpush.bf16.msra.mxu3 %v1167_v34  ;;  %609 = vmatpush.bf16.msra.mxu1 %v1163_v38  ;;  %v1148_v53 = vld [vmem:[#allocation8 + $0xb8] sm:$0xf0]  ;;  %v1375_v55 = vld [vmem:[#allocation8 + $0xb4] sm:$0xf0]  ;;  %v1087_v57 = vor.u32 %v1358_v49, %v1084_v51  ;;  %v1074_v59 = vld [vmem:[#allocation8 + $0x20] sm:$0xf] }
  0x41   : > { %v1151_v58 = vor.u32 %v1374_v52, %v1148_v53  ;;  %v1357_v60 = vld [vmem:[#allocation8 + $0x24] sm:$0xf0]  ;;  %v1356_v61 = vld [vmem:[#allocation8 + $0x24] sm:$0xf]  ;;  %v1147_v62 = vor.u32 %v1375_v55, %v1146_v54  ;;  %v1076_v63 = vld [vmem:[#allocation8 + $0x28] sm:$0xf0] }
  0x42   : > { %597 = vmatpush.bf16.msra.mxu0 %v1091_v44  ;;  %v1372_v0 = vld [vmem:[#allocation8 + $0xa4] sm:$0xf]  ;;  %v1140_v1 = vld [vmem:[#allocation8 + $0xa8] sm:$0xf0]  ;;  %v1138_v2 = vld [vmem:[#allocation8 + $0xa0] sm:$0xf]  ;;  %v1075_v4 = vor.u32 %v1357_v60, %v1074_v59  ;;  %v1079_v7 = vor.u32 %v1356_v61, %v1076_v63 }
  0x43   : > { %623 = vmatpush.bf16.msra.mxu2 %v1095_v45  ;;  %v1373_v3 = vld [vmem:[#allocation8 + $0xa4] sm:$0xf0]  ;;  %v1066_v5 = vld [vmem:[#allocation8 + $0x10] sm:$0xf]  ;;  %v1355_v6 = vld [vmem:[#allocation8 + $0x14] sm:$0xf0]  ;;  %v1143_v8 = vor.u32 %v1372_v0, %v1140_v1 }
  0x44   : > { %636 = vmatpush.bf16.msra.mxu3 %v1159_v46  ;;  %610 = vmatpush.bf16.msra.mxu1 %v1155_v50  ;;  %v1354_v9 = vld [vmem:[#allocation8 + $0x14] sm:$0xf]  ;;  %v1068_v10 = vld [vmem:[#allocation8 + $0x18] sm:$0xf0]  ;;  %v1139_v12 = vor.u32 %v1373_v3, %v1138_v2  ;;  %v1130_v14 = vld [vmem:[#allocation8 + $0x90] sm:$0xf]  ;;  %v1067_v19 = vor.u32 %v1355_v6, %v1066_v5 }
  0x45   : > { %v1370_v11 = vld [vmem:[#allocation8 + $0x94] sm:$0xf]  ;;  %v1132_v13 = vld [vmem:[#allocation8 + $0x98] sm:$0xf0]  ;;  %v1371_v15 = vld [vmem:[#allocation8 + $0x94] sm:$0xf0]  ;;  %v1071_v23 = vor.u32 %v1354_v9, %v1068_v10 }
  0x46   : > { %598 = vmatpush.bf16.msra.mxu0 %v1083_v56  ;;  %v1058_v16 = vld [vmem:[#allocation8] sm:$0xf]  ;;  %v1353_v17 = vld [vmem:[#allocation8 + $0x4] sm:$0xf0]  ;;  %v1352_v18 = vld [vmem:[#allocation8 + $0x4] sm:$0xf]  ;;  %v1135_v24 = vor.u32 %v1370_v11, %v1132_v13  ;;  %v1131_v29 = vor.u32 %v1371_v15, %v1130_v14 }
  0x47   : > { %624 = vmatpush.bf16.msra.mxu2 %v1087_v57  ;;  %v1060_v20 = vld [vmem:[#allocation8 + $0x8] sm:$0xf0]  ;;  %v1368_v21 = vld [vmem:[#allocation8 + $0x84] sm:$0xf]  ;;  %v1242_v25 = vld [vmem:[#allocation6 + $0x70] sm:$0xf]  ;;  %v1059_v37 = vor.u32 %v1353_v17, %v1058_v16 }
  0x48   : > { %637 = vmatpush.bf16.msra.mxu3 %v1151_v58  ;;  %611 = vmatpush.bf16.msra.mxu1 %v1147_v62  ;;  %v1124_v22 = vld [vmem:[#allocation8 + $0x88] sm:$0xf0]  ;;  %v1335_v26 = vld [vmem:[#allocation6 + $0x74] sm:$0xf0]  ;;  %v1334_v27 = vld [vmem:[#allocation6 + $0x74] sm:$0xf]  ;;  %v1063_v38 = vor.u32 %v1352_v18, %v1060_v20 }
  0x49   : > { %v1244_v28 = vld [vmem:[#allocation6 + $0x78] sm:$0xf0]  ;;  %v1350_v30 = vld [vmem:[#allocation6 + $0xf4] sm:$0xf]  ;;  %v1122_v32 = vld [vmem:[#allocation8 + $0x80] sm:$0xf]  ;;  %v1127_v43 = vor.u32 %v1368_v21, %v1124_v22  ;;  %v1243_v51 = vor.u32 %v1335_v26, %v1242_v25 }
  0x4a   : > { %599 = vmatpush.bf16.msra.mxu0 %v1075_v4  ;;  %v1308_v31 = vld [vmem:[#allocation6 + $0xf8] sm:$0xf0]  ;;  %v1369_v33 = vld [vmem:[#allocation8 + $0x84] sm:$0xf0]  ;;  %v1777_v34 = vld [vmem:[#allocation6 + $0xf0] sm:$0xf]  ;;  %v1247_v52 = vor.u32 %v1334_v27, %v1244_v28 }
  0x4b   : > { %625 = vmatpush.bf16.msra.mxu2 %v1079_v7  ;;  %v1779_v35 = vld [vmem:[#allocation6 + $0xf4] sm:$0xf0]  ;;  %v1782_v36 = vld [vmem:[%s1767_s8] sm:$0xff]  ;;  %v1786_v40 = vld [vmem:[#allocation6 + $0x64] sm:$0xf0]  ;;  %v1311_v57 = vor.u32 %v1350_v30, %v1308_v31  ;;  %v1123_v58 = vor.u32 %v1369_v33, %v1122_v32  ;;  %vm427_vm0 = vcmask 1041409  }
  0x4c   : > { %638 = vmatpush.bf16.msra.mxu3 %v1143_v8  ;;  %612 = vmatpush.bf16.msra.mxu1 %v1139_v12  ;;  %v1784_v39 = vld [vmem:[#allocation6 + $0x60] sm:$0xf]  ;;  %v1789_v41 = vld [vmem:[%s1767_s8 + $0x10] sm:$0xff]  ;;  %v1794_v44 = vld [vmem:[#allocation6 + $0x64] sm:$0xf]  ;;  %v1307_v0 = vor.u32 %v1779_v35, %v1777_v34  ;;  %s872_s22 = sld [smem:[#allocation2]] }
  0x4d   : > { %v1792_v42 = vld [vmem:[%s1767_s8 + $0x20] sm:$0xff]  ;;  %v1796_v45 = vld [vmem:[#allocation6 + $0x68] sm:$0xf0]  ;;  %v1802_v47 = vld [vmem:[%s1767_s8 + $0x50] sm:$0xff]  ;;  %v311_v49 = vmax.f32 %v1782_v36, %v1789_v41  ;;  %v271_v50 = vadd.f32 %v1789_v41, %v1782_v36  ;;  %v1235_v6 = vor.u32 %v1786_v40, %v1784_v39  ;;  %vm889_vm1 = vcmask 1040384   ;;  %s1896_s27 = scalar_lea.vmem [#allocation9], %s1052_s28 }
  0x4e   : > { %600 = vmatpush.bf16.msra.mxu0 %v1067_v19  ;;  %v1799_v46 = vld [vmem:[%s1767_s8 + $0x40] sm:$0xff]  ;;  %v1300_v54 = vld [vmem:[#allocation6 + $0xe8] sm:$0xf0]  ;;  %v1812_v55 = vld [vmem:[%s1767_s8 + $0x30] sm:$0xff]  ;;  %v1239_v12 = vor.u32 %v1794_v44, %v1796_v45  ;;  %s1385_s30 = sshll.u32 %s1686_s3, 7  ;;  %s947_s3 = sshll.u32 %s1896_s27, 4  ;;  %s948_s3 = int_to_ptr.vmem [resolvable:$true] %s947_s3 }
  0x4f   : > { %626 = vmatpush.bf16.msra.mxu2 %v1071_v23  ;;  %v1805_v48 = vld [vmem:[%s1767_s8 + $0x60] sm:$0xff]  ;;  %v329_v56 = vmax.f32 %v1799_v46, %v1802_v47  ;;  %v1349_v60 = vld [vmem:[#allocation6 + $0xe4] sm:$0xf0]  ;;  %v1819_v61 = vld [vmem:[%s1767_s8 + $0x70] sm:$0xff]  ;;  %v312_v62 = vmax.f32 %v311_v49, %v1792_v42  ;;  %v272_v63 = vadd.f32 %v271_v50, %v1792_v42  ;;  %s946_s7 = scalar_lea.hbm %s1963_s4, %s1385_s30  ;;  %s934_s10 = scalar_lea.sflag [#allocation5], %s1761_s26 }
  0x50   : > { %639 = vmatpush.bf16.msra.mxu3 %v1135_v24  ;;  %613 = vmatpush.bf16.msra.mxu1 %v1131_v29  ;;  %v1348_v53 = vld [vmem:[#allocation6 + $0xe4] sm:$0xf]  ;;  %v1816_v59 = vld [vmem:[#allocation6 + $0xe0] sm:$0xf]  ;;  %v1826_v2 = vld [vmem:[#allocation6 + $0x50] sm:$0xf]  ;;  %v289_v29 = vadd.f32 %v1802_v47, %v1799_v46 }
  0x51   : > { %v330_v1 = vmax.f32 %v329_v56, %v1805_v48  ;;  %v1828_v3 = vld [vmem:[#allocation6 + $0x54] sm:$0xf0]  ;;  %v1831_v4 = vld [vmem:[%s1767_s8 + $0x8] sm:$0xff]  ;;  %v313_v7 = vmax.f32 %v312_v62, %v1812_v55  ;;  %v1330_v8 = vld [vmem:[#allocation6 + $0x54] sm:$0xf]  ;;  %v273_v17 = vadd.f32 %v272_v63, %v1812_v55  ;;  %v1303_v18 = vor.u32 %v1348_v53, %v1300_v54  ;;  %s949_s9 = sshll.u32 %s946_s7, 4  ;;  %s950_s9 = int_to_ptr.hbm [resolvable:$true] %s949_s9 }
  0x52   : > { %601 = vmatpush.bf16.msra.mxu0 %v1059_v37  ;;  %v1834_v5 = vld [vmem:[%s1767_s8 + $0x18] sm:$0xff]  ;;  %v1840_v9 = vld [vmem:[%s1767_s8 + $0x28] sm:$0xff]  ;;  %v1346_v21 = vld [vmem:[#allocation6 + $0xd4] sm:$0xf]  ;;  %v1299_v24 = vor.u32 %v1349_v60, %v1816_v59  ;;  %v1227_v31 = vor.u32 %v1828_v3, %v1826_v2  ;;  %v290_v59 = vadd.f32 %v289_v29, %v1805_v48  ;;  %s1571_s12 = sshra.s32 %s950_s9, 4  ;;  %s1577_s16 = scalar_lea.hbm %s1963_s4, 256  ;;  %s1572_s12 = int_to_ptr.hbm [resolvable:$true] %s1571_s12 }
  0x53   : > { %627 = vmatpush.bf16.msra.mxu2 %v1063_v38  ;;  %v1843_v10 = vld [vmem:[%s1767_s8 + $0x48] sm:$0xff]  ;;  %v320_v11 = vmax.f32 %v1831_v4, %v1834_v5  ;;  %v331_v13 = vmax.f32 %v330_v1, %v1819_v61  ;;  %v1851_v14 = vld [vmem:[%s1767_s8 + $0x38] sm:$0xff]  ;;  %v314_v19 = vrot.slane %v313_v7, 4  ;;  %v274_v28 = vrot.slane %v273_v17, 4  ;;  %v1290_v34 = vld [vmem:[#allocation6 + $0xd0] sm:$0xf]  ;;  %p1578_p11 = scmp.lt.s32.totalorder %s1572_s12, %s1963_s4 }
  0x54   : > { %640 = vmatpush.bf16.msra.mxu3 %v1127_v43  ;;  %v1854_v15 = vld [vmem:[%s1767_s8 + $0x58] sm:$0xff]  ;;  %v1857_v16 = vld [vmem:[%s1767_s8 + $0x68] sm:$0xff]  ;;  %614 = vmatpush.bf16.msra.mxu1 %v1123_v58  ;;  %v1218_v39 = vld [vmem:[#allocation6 + $0x40] sm:$0xf]  ;;  %v280_v2 = vadd.f32 %v1834_v5, %v1831_v4  ;;  %s1573_s13 = scalar_lea.hbm %s1572_s12, 128 }
  0x55   : > { %v1228_v20 = vld [vmem:[#allocation6 + $0x58] sm:$0xf0]  ;;  %v321_v22 = vmax.f32 %v320_v11, %v1840_v9  ;;  %v338_v23 = vmax.f32 %v1843_v10, %v1854_v15  ;;  %v332_v25 = vrot.slane %v331_v13, 4  ;;  %v315_v30 = vmax.f32 %v313_v7, %v314_v19  ;;  %v1347_v35 = vld [vmem:[#allocation6 + $0xd4] sm:$0xf0]  ;;  %p1574_p1 = scmp.ne.s32.totalorder %s1572_s12, %s1573_s13  ;;  %p1579_p2 = scmp.lt.s32.totalorder %s1577_s16, %s1573_s13 }
  0x56   : > { %820 = vmatpush.bf16.msrb.mxu0 %v1243_v51  ;;  %v1292_v26 = vld [vmem:[#allocation6 + $0xd8] sm:$0xf0]  ;;  %v1231_v38 = vor.u32 %v1330_v8, %v1228_v20  ;;  %v1329_v40 = vld [vmem:[#allocation6 + $0x44] sm:$0xf0]  ;;  %v275_v43 = vadd.f32 %v274_v28, %v273_v17  ;;  %v1328_v51 = vld [vmem:[#allocation6 + $0x44] sm:$0xf]  ;;  %v1291_v54 = vor.u32 %v1347_v35, %v1290_v34 }
  0x57   : > { %846 = vmatpush.bf16.msrb.mxu2 %v1247_v52  ;;  %v1865_v27 = vld [vmem:[%s1767_s8 + $0x78] sm:$0xff]  ;;  %v322_v32 = vmax.f32 %v321_v22, %v1851_v14  ;;  %v339_v33 = vmax.f32 %v338_v23, %v1857_v16  ;;  %v333_v37 = vmax.f32 %v331_v13, %v332_v25  ;;  %v316_v44 = vrot.slane %v315_v30, 2  ;;  %v1220_v52 = vld [vmem:[#allocation6 + $0x48] sm:$0xf0]  ;;  %v1344_v56 = vld [vmem:[#allocation6 + $0xc4] sm:$0xf]  ;;  %p1575_p4 = pnand %p1574_p1, %p1731_p3  ;;  %p1580_p9 = por %p1579_p2, %p1578_p11 }
  0x58   : > { %859 = vmatpush.bf16.msrb.mxu3 %v1311_v57  ;;  %833 = vmatpush.bf16.msrb.mxu1 %v1307_v0  ;;  %v1295_v45 = vor.u32 %v1346_v21, %v1292_v26  ;;  %v1284_v57 = vld [vmem:[#allocation6 + $0xc8] sm:$0xf0]  ;;  %v276_v58 = vrot.slane %v275_v43, 2  ;;  %v1282_v0 = vld [vmem:[#allocation6 + $0xc0] sm:$0xf]  ;;  %v1223_v7 = vor.u32 %v1328_v51, %v1220_v52  ;;  %v298_v26 = vadd.f32 %v1854_v15, %v1843_v10 }
  0x59   : > { %v323_v49 = vrot.slane %v322_v32, 4  ;;  %v340_v50 = vmax.f32 %v339_v33, %v1865_v27  ;;  %v334_v53 = vrot.slane %v333_v37, 2  ;;  %v317_v60 = vmax.f32 %v315_v30, %v316_v44  ;;  %v1345_v1 = vld [vmem:[#allocation6 + $0xc4] sm:$0xf0]  ;;  %v1210_v8 = vld [vmem:[#allocation6 + $0x30] sm:$0xf]  ;;  %p1576_p8 = pneg %p1575_p4 }
  0x5a   : > { %821 = vmatpush.bf16.msrb.mxu0 %v1235_v6  ;;  %v1219_v6 = vor.u32 %v1329_v40, %v1218_v39  ;;  %v1327_v11 = vld [vmem:[#allocation6 + $0x34] sm:$0xf0]  ;;  %v1326_v19 = vld [vmem:[#allocation6 + $0x34] sm:$0xf]  ;;  %v1212_v20 = vld [vmem:[#allocation6 + $0x38] sm:$0xf0]  ;;  %v1283_v22 = vor.u32 %v1345_v1, %v1282_v0  ;;  %v277_v25 = vadd.f32 %v276_v58, %v275_v43  ;;  %v281_v39 = vadd.f32 %v280_v2, %v1840_v9 }
  0x5b   : > { %847 = vmatpush.bf16.msrb.mxu2 %v1239_v12  ;;  %v324_v62 = vmax.f32 %v322_v32, %v323_v49  ;;  %v341_v63 = vrot.slane %v340_v50, 4  ;;  %v335_v3 = vmax.f32 %v333_v37, %v334_v53  ;;  %v318_v12 = vrot.slane %v317_v60, 1  ;;  %v1342_v23 = vld [vmem:[#allocation6 + $0xb4] sm:$0xf]  ;;  %v1274_v32 = vld [vmem:[#allocation6 + $0xb0] sm:$0xf]  ;;  %p1581_p10 = pnand %p1580_p9, %p1576_p8 }
  0x5c   : > { %860 = vmatpush.bf16.msrb.mxu3 %v1303_v18  ;;  %834 = vmatpush.bf16.msrb.mxu1 %v1299_v24  ;;  %v1287_v18 = vor.u32 %v1344_v56, %v1284_v57  ;;  %v1276_v24 = vld [vmem:[#allocation6 + $0xb8] sm:$0xf0]  ;;  %v1343_v33 = vld [vmem:[#allocation6 + $0xb4] sm:$0xf0]  ;;  %v1215_v35 = vor.u32 %v1326_v19, %v1212_v20  ;;  %v1202_v37 = vld [vmem:[#allocation6 + $0x20] sm:$0xf]  ;;  %v291_v57 = vadd.f32 %v290_v59, %v1819_v61 }
  0x5d   : > { %v325_v13 = vrot.slane %v324_v62, 2  ;;  %v342_v17 = vmax.f32 %v340_v50, %v341_v63  ;;  %v336_v21 = vrot.slane %v335_v3, 1  ;;  %v319_v28 = vmax.f32 %v317_v60, %v318_v12  ;;  %v1324_v49 = vld [vmem:[#allocation6 + $0x24] sm:$0xf]  ;;  %v1204_v50 = vld [vmem:[#allocation6 + $0x28] sm:$0xf0] }
  0x5e   : > { %822 = vmatpush.bf16.msrb.mxu0 %v1227_v31  ;;  %v1211_v31 = vor.u32 %v1327_v11, %v1210_v8  ;;  %v1275_v52 = vor.u32 %v1343_v33, %v1274_v32  ;;  %v1340_v53 = vld [vmem:[#allocation6 + $0xa4] sm:$0xf]  ;;  %v278_v56 = vrot.slane %v277_v25, 1  ;;  %v1266_v0 = vld [vmem:[#allocation6 + $0xa0] sm:$0xf]  ;;  %v282_v8 = vadd.f32 %v281_v39, %v1851_v14 }
  0x5f   : > { %848 = vmatpush.bf16.msrb.mxu2 %v1231_v38  ;;  %v326_v29 = vmax.f32 %v324_v62, %v325_v13  ;;  %v343_v30 = vrot.slane %v342_v17, 2  ;;  %v337_v34 = vmax.f32 %v335_v3, %v336_v21  ;;  %v1325_v38 = vld [vmem:[#allocation6 + $0x24] sm:$0xf0]  ;;  %v383_v40 = vpack.c.bf16 %v319_v28, %v319_v28  ;;  %v1338_v19 = vld [vmem:[#allocation6 + $0x94] sm:$0xf] }
  0x60   : > { %861 = vmatpush.bf16.msrb.mxu3 %v1295_v45  ;;  %835 = vmatpush.bf16.msrb.mxu1 %v1291_v54  ;;  %v1279_v45 = vor.u32 %v1342_v23, %v1276_v24  ;;  %v1268_v54 = vld [vmem:[#allocation6 + $0xa8] sm:$0xf0]  ;;  %v1203_v63 = vor.u32 %v1325_v38, %v1202_v37  ;;  %v1341_v1 = vld [vmem:[#allocation6 + $0xa4] sm:$0xf0]  ;;  %v1207_v3 = vor.u32 %v1324_v49, %v1204_v50  ;;  %v1258_v23 = vld [vmem:[#allocation6 + $0x90] sm:$0xf] }
  0x61   : > { %v327_v43 = vrot.slane %v326_v29, 1  ;;  %v344_v44 = vmax.f32 %v342_v17, %v343_v30  ;;  %v385_v51 = vpack.c.bf16 %v337_v34, %v337_v34  ;;  %v423_v58 = vunpack.c.l.b16 %v383_v40  ;;  %v1322_v17 = vld [vmem:[#allocation6 + $0x14] sm:$0xf]  ;;  %v1186_v33 = vld [vmem:[#allocation6] sm:$0xf] }
  0x62   : > { %823 = vmatpush.bf16.msrb.mxu0 %v1219_v6  ;;  %v1194_v6 = vld [vmem:[#allocation6 + $0x10] sm:$0xf]  ;;  %v299_v11 = vadd.f32 %v298_v26, %v1857_v16  ;;  %v1271_v59 = vor.u32 %v1340_v53, %v1268_v54  ;;  %v1267_v21 = vor.u32 %v1341_v1, %v1266_v0  ;;  %v279_v24 = vadd.f32 %v278_v56, %v277_v25  ;;  %v1339_v26 = vld [vmem:[#allocation6 + $0x94] sm:$0xf0]  ;;  %v1321_v34 = vld [vmem:[#allocation6 + $0x4] sm:$0xf0] }
  0x63   : > { %849 = vmatpush.bf16.msrb.mxu2 %v1223_v7  ;;  %v328_v60 = vmax.f32 %v326_v29, %v327_v43  ;;  %v345_v62 = vrot.slane %v344_v44, 1  ;;  %v425_v2 = vunpack.c.l.b16 %v385_v51  ;;  %v1323_v7 = vld [vmem:[#allocation6 + $0x14] sm:$0xf0]  ;;  %v292_v28 = vrot.slane %v291_v57, 4  ;;  %v1320_v37 = vld [vmem:[#allocation6 + $0x4] sm:$0xf] }
  0x64   : > { %862 = vmatpush.bf16.msrb.mxu3 %v1287_v18  ;;  %836 = vmatpush.bf16.msrb.mxu1 %v1283_v22  ;;  %v1196_v18 = vld [vmem:[#allocation6 + $0x18] sm:$0xf0]  ;;  %v1195_v32 = vor.u32 %v1323_v7, %v1194_v6  ;;  %v1188_v38 = vld [vmem:[#allocation6 + $0x8] sm:$0xf0]  ;;  %v283_v40 = vrot.slane %v282_v8, 4  ;;  %v300_v43 = vadd.f32 %v299_v11, %v1865_v27  ;;  %v1187_v53 = vor.u32 %v1321_v34, %v1186_v33 }
  0x65   : > { %v346_v12 = vmax.f32 %v344_v44, %v345_v62  ;;  %v384_v13 = vpack.c.bf16 %v328_v60, %v328_v60  ;;  %v428_v20 = vsel %vm427_vm0, %v425_v2, %v423_v58  ;;  %v1260_v22 = vld [vmem:[#allocation6 + $0x98] sm:$0xf0]  ;;  %v293_v39 = vadd.f32 %v292_v28, %v291_v57  ;;  %v1336_v56 = vld [vmem:[#allocation6 + $0x84] sm:$0xf]  ;;  %v1252_v58 = vld [vmem:[#allocation6 + $0x88] sm:$0xf0] }
  0x66   : > { %824 = vmatpush.bf16.msrb.mxu0 %v1211_v31  ;;  %v430_v29 = vpack.c.b16 %v428_v20, %v428_v20  ;;  %v1263_v25 = vor.u32 %v1338_v19, %v1260_v22  ;;  %v284_v50 = vadd.f32 %v283_v40, %v282_v8  ;;  %v301_v51 = vrot.slane %v300_v43, 4  ;;  %v1250_v62 = vld [vmem:[#allocation6 + $0x80] sm:$0xf] }
  0x67   : > { %850 = vmatpush.bf16.msrb.mxu2 %v1215_v35  ;;  %v386_v30 = vpack.c.bf16 %v346_v12, %v346_v12  ;;  %v424_v31 = vunpack.c.l.b16 %v384_v13  ;;  %v1199_v35 = vor.u32 %v1322_v17, %v1196_v18  ;;  %v294_v49 = vrot.slane %v293_v39, 2 }
  0x68   : > { %863 = vmatpush.bf16.msrb.mxu3 %v1279_v45  ;;  %837 = vmatpush.bf16.msrb.mxu1 %v1275_v52  ;;  %v1259_v45 = vor.u32 %v1339_v26, %v1258_v23  ;;  %v1191_v54 = vor.u32 %v1320_v37, %v1188_v38  ;;  %v307_v57 = vmul.f32 0.03125, %v279_v24  ;;  %v285_v1 = vrot.slane %v284_v50, 2 }
  0x69   : > { %628 = vmatmul.bf16.vlgmr.msra.gmra.mxu2 %v430_v29  ;;  %v426_v44 = vunpack.c.l.b16 %v386_v30  ;;  %602 = vmatmul.bf16.vlgmr.msra.gmra.mxu0 %v430_v29  ;;  %v295_v0 = vadd.f32 %v294_v49, %v293_v39  ;;  %v302_v2 = vadd.f32 %v301_v51, %v300_v43  ;;  %v1255_v8 = vor.u32 %v1336_v56, %v1252_v58 }
  0x6a   : > { %825 = vmatpush.bf16.msrb.mxu0 %v1203_v63  ;;  %v1337_v63 = vld [vmem:[#allocation6 + $0x84] sm:$0xf0]  ;;  %v286_v6 = vadd.f32 %v285_v1, %v284_v50  ;;  %v347_v13 = vpack.c.bf16 %v307_v57, %v307_v57 }
  0x6b   : > { %851 = vmatpush.bf16.msrb.mxu2 %v1207_v3  ;;  %v429_v52 = vsel %vm427_vm0, %v426_v44, %v424_v31  ;;  %v296_v3 = vrot.slane %v295_v0, 1  ;;  %v303_v7 = vrot.slane %v302_v2, 2  ;;  %v1251_v11 = vor.u32 %v1337_v63, %v1250_v62 }
  0x6c   : > { %864 = vmatpush.bf16.msrb.mxu3 %v1271_v59  ;;  %838 = vmatpush.bf16.msrb.mxu1 %v1267_v21  ;;  %v431_v60 = vpack.c.b16 %v429_v52, %v429_v52  ;;  %v287_v59 = vrot.slane %v286_v6, 1  ;;  %v650_v22 = vunpack.c.l.b16 %v347_v13 }
  0x6d   : > { %v297_v12 = vadd.f32 %v296_v3, %v295_v0  ;;  %v304_v17 = vadd.f32 %v303_v7, %v302_v2 }
  0x6e   : > { %826 = vmatpush.bf16.msrb.mxu0 %v1195_v32  ;;  %641 = vmatmul.bf16.vlgmr.msra.gmra.mxu3 %v431_v60  ;;  %v288_v19 = vadd.f32 %v287_v59, %v286_v6 }
  0x6f   : > { %852 = vmatpush.bf16.msrb.mxu2 %v1199_v35  ;;  %615 = vmatmul.bf16.vlgmr.msra.gmra.mxu1 %v431_v60  ;;  %v309_v18 = vmul.f32 0.03125, %v297_v12  ;;  %v305_v20 = vrot.slane %v304_v17, 1 }
  0x70   : > { %865 = vmatpush.bf16.msrb.mxu3 %v1263_v25  ;;  %839 = vmatpush.bf16.msrb.mxu1 %v1259_v45  ;;  %v308_v24 = vmul.f32 0.03125, %v288_v19 }
  0x71   : > { %v349_v21 = vpack.c.bf16 %v309_v18, %v309_v18  ;;  %v306_v23 = vadd.f32 %v305_v20, %v304_v17 }
  0x72   : > { %827 = vmatpush.bf16.msrb.mxu0 %v1187_v53  ;;  %v348_v30 = vpack.c.bf16 %v308_v24, %v308_v24 }
  0x73   : > { %853 = vmatpush.bf16.msrb.mxu2 %v1191_v54  ;;  %v652_v28 = vunpack.c.l.b16 %v349_v21  ;;  %v310_v29 = vmul.f32 0.03125, %v306_v23  ;;  %v873_v54 = vstv %s872_s22 }
  0x74   : > { %866 = vmatpush.bf16.msrb.mxu3 %v1255_v8  ;;  %840 = vmatpush.bf16.msrb.mxu1 %v1251_v11  ;;  %v651_v26 = vunpack.c.l.b16 %v348_v30 }
  0x75   : > { %v654_v31 = vsel %vm427_vm0, %v652_v28, %v650_v22  ;;  %v350_v32 = vpack.c.bf16 %v310_v29, %v310_v29 }
  0x76   : > { %v656_v33 = vpack.c.b16 %v654_v31, %v654_v31 }
  0x77   : > { %v653_v34 = vunpack.c.l.b16 %v350_v32 }
  0x79   : > { %828 = vmatmul.bf16.vlgmr.msrb.gmra.mxu0 %v656_v33  ;;  %854 = vmatmul.bf16.vlgmr.msrb.gmra.mxu2 %v656_v33  ;;  %v655_v35 = vsel %vm427_vm0, %v653_v34, %v651_v26 }
  0x7a   : > { %v657_v37 = vpack.c.b16 %v655_v35, %v655_v35 }
  0x7e   : > { %867 = vmatmul.bf16.vlgmr.msrb.gmra.mxu3 %v657_v37 }
  0x7f   : > { %841 = vmatmul.bf16.vlgmr.msrb.gmra.mxu1 %v657_v37 }
  0xe6   : > { %v603_v38 = vpop.f32.mrf.mxu0 }
  0xec   : > { %v616_v39 = vpop.f32.mrf.mxu1  ;;  %v629_v40 = vpop.f32.mrf.mxu2 }
  0xed   : > { %v617_v49 = vadd.f32 %v616_v39, %v603_v38 }
  0xee   : > { %v605_v43 = vpop.f32.mrf.mxu0 }
  0xf1   : > { %v642_v44 = vpop.f32.mrf.mxu3 }
  0xf2   : > { %v643_v56 = vadd.f32 %v642_v44, %v629_v40 }
  0xf4   : > { %v618_v25 = vpop.f32.mrf.mxu1  ;;  %v631_v45 = vpop.f32.mrf.mxu2 }
  0xf6   : > { %v829_v50 = vpop.f32.mrf.mxu0 }
  0xf7   : > { %v830_v52 = vadd.f32 %v829_v50, %v617_v49 }
  0xf9   : > { %v644_v51 = vpop.f32.mrf.mxu3 }
  0xfc   : > { %v842_v53 = vpop.f32.mrf.mxu1  ;;  %v855_v57 = vpop.f32.mrf.mxu2 }
  0xfd   : > { %v843_v58 = vadd.f32 %v842_v53, %v830_v52  ;;  %v856_v62 = vadd.f32 %v855_v57, %v643_v56 }
  0xfe   : > { %v831_v63 = vpop.f32.mrf.mxu0 }
  0xff   : > { %v874_v60 = vadd.f32 %v873_v54, %v843_v58 }
 0x101   : > { %v876_v0 = vsub.f32 0.0, %v874_v60  ;;  %v868_v1 = vpop.f32.mrf.mxu3 }
 0x102   : > { %v869_v2 = vadd.f32 %v868_v1, %v856_v62 }
 0x103   : > { %v878_v6 = vmul.f32 1.442695, %v876_v0 }
 0x104   : > { %v844_v3 = vpop.f32.mrf.mxu1  ;;  %v875_v7 = vadd.f32 %v873_v54, %v869_v2  ;;  %v857_v8 = vpop.f32.mrf.mxu2 }
 0x105   : > { %1459 = vpow2.f32 %v878_v6 }
 0x106   : > { %v877_v11 = vsub.f32 0.0, %v875_v7 }
 0x108   : > { %v880_v12 = vmul.f32 1.442695, %v877_v11 }
 0x109   : > { %v870_v13 = vpop.f32.mrf.mxu3 }
 0x10a   : > { %1461 = vpow2.f32 %v880_v12 }
 0x10b   : > { %v1460_v59 = vpop.eup %1459 }
 0x10c   : > { %v882_v18 = vadd.f32 1.0, %v1460_v59 }
 0x110   : > { %v1462_v17 = vpop.eup %1461 }
 0x111   : > { %v883_v19 = vadd.f32 1.0, %v1462_v17 }
 0x113   : > { %1463 = vrcp.f32 %v883_v19 }
 0x114   : > { %1465 = vrcp.f32 %v882_v18 }
 0x119   : > { %v1464_v20 = vpop.eup %1463 }
 0x11a   : > { %v888_v21 = vrot.slane %v1464_v20, 7  ;;  %v1466_v22 = vpop.eup %1465 }
 0x11c   : > { %v890_v23 = vsel %vm889_vm1, %v1466_v22, %v888_v21  ;;  %v891_v24 = vsel %vm427_vm0, %v1466_v22, %v888_v21 }
 0x11d   : > { %v892_v28 = vrot.slane %v891_v24, 1  ;;  %v893_v29 = vperm.slane %v890_v23, 0  ;;  %v894_v30 = vperm.slane %v890_v23, 1 }
 0x11f   : > { %v901_v31 = vmul.f32 %v893_v29, %v1782_v36  ;;  %v902_v32 = vmul.f32 %v894_v30, %v1831_v4  ;;  %v903_v26 = vmul.f32 %v893_v29, %v1789_v41  ;;  %v904_v33 = vmul.f32 %v894_v30, %v1834_v5 }
 0x120   : > { %v895_v34 = vperm.slane %v892_v28, 0  ;;  %v905_v35 = vmul.f32 %v893_v29, %v1792_v42  ;;  %v896_v36 = vperm.slane %v892_v28, 1  ;;  %v906_v41 = vmul.f32 %v894_v30, %v1840_v9 }
 0x121   : > { %917 = vst [vmem:[%s1896_s27] sm:$0xff] %v901_v31  ;;  %v907_v4 = vmul.f32 %v893_v29, %v1812_v55  ;;  %v908_v42 = vmul.f32 %v894_v30, %v1851_v14 }
 0x122   : > { %918 = vst [vmem:[%s1896_s27 + $0x8] sm:$0xff] %v902_v32  ;;  %v909_v5 = vmul.f32 %v895_v34, %v1799_v46  ;;  %v910_v37 = vmul.f32 %v896_v36, %v1843_v10  ;;  %v911_v9 = vmul.f32 %v895_v34, %v1802_v47  ;;  %v912_v55 = vmul.f32 %v896_v36, %v1854_v15 }
 0x123   : > { %919 = vst [vmem:[%s1896_s27 + $0x10] sm:$0xff] %v903_v26  ;;  %v913_v46 = vmul.f32 %v895_v34, %v1805_v48  ;;  %v914_v10 = vmul.f32 %v896_v36, %v1857_v16  ;;  %v915_v47 = vmul.f32 %v895_v34, %v1819_v61  ;;  %v916_v14 = vmul.f32 %v896_v36, %v1865_v27 }
 0x124   : > { %920 = vst [vmem:[%s1896_s27 + $0x18] sm:$0xff] %v904_v33 }
 0x125   : > { %921 = vst [vmem:[%s1896_s27 + $0x20] sm:$0xff] %v905_v35 }
 0x126   : > { %922 = vst [vmem:[%s1896_s27 + $0x28] sm:$0xff] %v906_v41 }
 0x127   : > { %923 = vst [vmem:[%s1896_s27 + $0x30] sm:$0xff] %v907_v4 }
 0x128   : > { %924 = vst [vmem:[%s1896_s27 + $0x38] sm:$0xff] %v908_v42 }
 0x129   : > { %925 = vst [vmem:[%s1896_s27 + $0x40] sm:$0xff] %v909_v5 }
 0x12a   : > { %926 = vst [vmem:[%s1896_s27 + $0x48] sm:$0xff] %v910_v37 }
 0x12b   : > { %927 = vst [vmem:[%s1896_s27 + $0x50] sm:$0xff] %v911_v9 }
 0x12c   : > { %928 = vst [vmem:[%s1896_s27 + $0x58] sm:$0xff] %v912_v55 }
 0x12d   : > { %929 = vst [vmem:[%s1896_s27 + $0x60] sm:$0xff] %v913_v46 }
 0x12e   : > { %930 = vst [vmem:[%s1896_s27 + $0x68] sm:$0xff] %v914_v10 }
 0x12f   : > { %931 = vst [vmem:[%s1896_s27 + $0x70] sm:$0xff] %v915_v47 }
 0x130   : > { %932 = vst [vmem:[%s1896_s27 + $0x78] sm:$0xff] %v916_v14 }
 0x131   : > { %1584 = shalt.err (!%p1581_p10)
}
 0x132   : > { %s1635_s26 = smov 256   ;;  %s1636_s29 = smov 16  }
 0x133   : > { %1396 = dma.vmem_to_hbm [thread:$0]  (%p1731_p3), %s948_s3, 2048, %s950_s9, %s934_s10, %s1635_s26, %s1635_s26, %s1636_s29  }
 0x134 PF: > { %s964_s8 = sand.u32 1, %s1615_s17   ;;  %p1969_p12 = scmp.ge.s32.totalorder %s1627_s20, 2 }
 0x135   : > { %s965_s22 = scalar_lea.sflag [#allocation5], %s964_s8 }
 0x136   : > { %p1410_p13 = pnand %p1969_p12, %p1700_p6 }
 0x138   : > { %p1411_p0 = pneg %p1410_p13 }
 0x13a   : > { %1610 = dma.done.wait (%p1411_p0), %s965_s22, 2048  }
 0x13b   : > { %1612 = vsyncadd (%p1411_p0), %s965_s22, 4294965248  ;;  %p19_p5 = scmp.ge.s32.totalorder %s1721_s11, 4   ;;  %s1970_s17 = smov %s1619_s18 }
 0x13c   : > { %s1971_s18 = smov %s1623_s19  ;;  %s1972_s19 = smov %s1737_s15 }
 0x13d   : > { %s1973_s20 = smov %s1721_s11  ;;  %21 = sbr.rel (!%p19_p5) target bundleno = 8 (0x8), region = 89 }
 0x142   :  { %971 = vsyncpa [#allocation4], 1 }
 0x143   :  { %973 = vsyncpa [#allocation4 + $0x1], 1 }
 0x144   :  { %974 = vsyncpa [#allocation7], 1 }
 0x145   :  { %975 = vsyncpa [#allocation5], 1 }
 0x146   :  { %977 = vsyncpa [#allocation5 + $0x1], 1 }

</bundles_post_ra>
